<compile_context>
chip_gen: v6e
topology: v6e:2x2x1
jax: 0.10.0
libtpu: 0.0.40
codegen_flags: <defaults>
</compile_context>

<pallas_src>
import jax
import jax.numpy as jnp
from jax.experimental import pallas as pl
from jax.experimental.pallas import tpu as pltpu


def _silu_kernel(x_ref, o_ref):
    # SiLU / swish: x * sigmoid(x). Compute in f32 (v5e has no bf16 VPU/EUP;
    # the kernel is HBM-bound, so the cast/EUP work hides under the DMA stream).
    # TODO(synk): optional bf16 compute path on v6e/v7x if reduced-precision
    # sigmoid is acceptable (trims VALU work where HBM is fastest).
    x = x_ref[...].astype(jnp.float32)
    o_ref[...] = (x * jax.nn.sigmoid(x)).astype(o_ref.dtype)


_MIN_TILE = 8 * 128                       # minimum (sublane, lane) alignment
_LANE_CANDIDATES = (8192, 4096, 2048, 1024, 512, 256, 128)
_MIB = 1024 * 1024


def _round_down(v, m):
    return (v // m) * m


def _round_up(v, m):
    return -(-v // m) * m


def _device_vmem_capacity_bytes():
    """VMEM capacity of the current TPU generation; conservative fallback."""
    try:
        return int(pltpu.get_tpu_info().vmem_capacity_bytes)
    except Exception:
        return 64 * _MIB  # assume v7x (smallest physical VMEM) if query fails


def _silu_impl(x):
    orig_shape = x.shape
    orig_dtype = x.dtype
    n = x.size
    if n == 0:
        return x

    itemsize = jnp.dtype(orig_dtype).itemsize
    x_flat = x.reshape(-1)

    # Pad the flat length to a multiple of 8*128 ONLY when needed; aligned
    # activations (the common case) take the copy-free path.
    n_pad = _round_up(n, _MIN_TILE)
    padded = n_pad != n
    if padded:
        x_flat = jnp.pad(x_flat, (0, n_pad - n))

    # Wide, lane-dense 2D view: widest power-of-two lane width (multiple of
    # 128) dividing the flat length. n_pad is a multiple of 1024 => lane>=1024.
    lane = 128
    for cand in _LANE_CANDIDATES:
        if n_pad % cand == 0:
            lane = cand
            break
    rows = n_pad // lane
    x2d = x_flat.reshape(rows, lane)

    # ---- Generation- and dtype-aware block sizing -------------------------
    vmem_cap = _device_vmem_capacity_bytes()
    # Bytes of HBM traffic per block held constant across dtypes.
    target_block_bytes = 16 * _MIB if vmem_cap >= 96 * _MIB else 8 * _MIB
    target_elems = max(_MIN_TILE, target_block_bytes // itemsize)
    target_rows = max(32, _round_down(target_elems // lane, 32))
    block_rows = min(rows, target_rows)

    # Guarantee >=2 blocks on mid-size tensors so both of v7x's TensorCores
    # get work (harmless on single-core v5e/v6e).
    total_bytes = rows * lane * itemsize
    if pl.cdiv(rows, block_rows) == 1 and total_bytes > 2 * _MIB and rows >= 16:
        half = pl.cdiv(rows, 2)
        for align in (32, 8):
            cand_rows = max(align, _round_up(half, align))
            if cand_rows < rows:
                block_rows = cand_rows
                break

    grid = (pl.cdiv(rows, block_rows),)

    # VMEM budget: Pallas double-buffers BOTH input and output blocks, so the
    # real footprint is ~4x the block bytes. Leave headroom and stay under the
    # physical capacity (v7x only has 64 MiB per TensorCore).
    block_bytes = block_rows * lane * itemsize
    vmem_limit = max(16 * _MIB,
                     min(vmem_cap - 16 * _MIB, 4 * block_bytes + 16 * _MIB))

    compiler_params = pltpu.CompilerParams(
        dimension_semantics=("parallel",),
        vmem_limit_bytes=int(vmem_limit),
        # For ragged shapes, let XLA fuse the pad into the Pallas input DMA
        # (avoids materializing the padded copy in HBM when called under jit).
        allow_input_fusion=[True] if padded else None,
    )

    out2d = pl.pallas_call(
        _silu_kernel,
        out_shape=jax.ShapeDtypeStruct((rows, lane), orig_dtype),
        grid=grid,
        in_specs=[pl.BlockSpec((block_rows, lane), lambda i: (i, 0))],
        out_specs=pl.BlockSpec((block_rows, lane), lambda i: (i, 0)),
        compiler_params=compiler_params,
    )(x2d)

    out_flat = out2d.reshape(-1)
    if padded:
        out_flat = out_flat[:n]
    return out_flat.reshape(orig_shape)


# jit so the surrounding reshape/pad/slice plumbing can fuse around the
# Pallas call instead of round-tripping through HBM as separate XLA ops.
silu = jax.jit(_silu_impl)


if __name__ == "__main__":
    key = jax.random.PRNGKey(0)

    # NCHW activation consistent with conv-net usage: batch=2, channels=4, 16x16.
    x = jax.random.normal(key, (2, 4, 16, 16), dtype=jnp.float32)
    y = silu(x)
    jax.block_until_ready(y)
    y_ref = x * jax.nn.sigmoid(x)
    assert y.shape == x.shape and y.dtype == x.dtype
    assert jnp.allclose(y, y_ref, atol=1e-6, rtol=1e-6)

    # Ragged (unaligned) shape exercising the padded / input-fusion path.
    x2 = jax.random.normal(jax.random.PRNGKey(1), (3, 5, 7, 9), dtype=jnp.float32)
    y2 = silu(x2)
    jax.block_until_ready(y2)
    y2_ref = x2 * jax.nn.sigmoid(x2)
    assert y2.shape == x2.shape and y2.dtype == x2.dtype
    assert jnp.allclose(y2, y2_ref, atol=1e-6, rtol=1e-6)

    # bf16 input exercising the dtype-aware (bytes-per-block) sizing path.
    x3 = jax.random.normal(jax.random.PRNGKey(2), (2, 4, 16, 16),
                           dtype=jnp.bfloat16)
    y3 = silu(x3)
    jax.block_until_ready(y3)
    y3_ref = (x3.astype(jnp.float32) * jax.nn.sigmoid(x3.astype(jnp.float32)))
    assert y3.shape == x3.shape and y3.dtype == x3.dtype
    assert jnp.allclose(y3.astype(jnp.float32), y3_ref, atol=5e-2, rtol=5e-2)

    print("KERNEL_OK")
</pallas_src>

<mosaic_0001>
module attributes {stable_mosaic.version = 11 : i64} {
  func.func @_silu_kernel(%arg0: i32, %arg1: memref<1x2048xf32, #tpu.memory_space<vmem>>, %arg2: memref<1x2048xf32, #tpu.memory_space<vmem>>) attributes {dimension_semantics = [#tpu.dimension_semantics<parallel>], iteration_bounds = array<i64: 1>, scalar_prefetch = 0 : i64, scratch_operands = 0 : i64, tpu.core_type = #tpu.core_type<tc>, window_params = [{transform_indices = @transform_0, window_bounds = array<i64: 1, 2048>}, {transform_indices = @transform_1, window_bounds = array<i64: 1, 2048>}]} {
    %c0 = arith.constant 0 : index
    %c0_0 = arith.constant 0 : index
    %0 = vector.load %arg1[%c0, %c0_0] : memref<1x2048xf32, #tpu.memory_space<vmem>>, vector<1x2048xf32>
    %1 = arith.negf %0 : vector<1x2048xf32>
    %2 = math.exp %1 : vector<1x2048xf32>
    %cst = arith.constant 1.000000e+00 : f32
    %3 = vector.broadcast %cst : f32 to vector<1x2048xf32>
    %4 = arith.addf %3, %2 : vector<1x2048xf32>
    %5 = arith.divf %3, %4 : vector<1x2048xf32>
    %6 = arith.mulf %0, %5 : vector<1x2048xf32>
    %c0_1 = arith.constant 0 : index
    %c0_2 = arith.constant 0 : index
    %7 = vector.load %arg2[%c0_1, %c0_2] : memref<1x2048xf32, #tpu.memory_space<vmem>>, vector<1x2048xf32>
    tpu.vector_store %arg2[%c0_1, %c0_2], %6 {strides = array<i32>} : memref<1x2048xf32, #tpu.memory_space<vmem>>, vector<1x2048xf32>,
    return
  }
  func.func @transform_0(%arg0: i32) -> (i32, i32) {
    %c0_i32 = arith.constant 0 : i32
    %c0_i32_0 = arith.constant 0 : i32
    return %arg0, %c0_i32 : i32, i32
  }
  func.func @transform_1(%arg0: i32) -> (i32, i32) {
    %c0_i32 = arith.constant 0 : i32
    %c0_i32_0 = arith.constant 0 : i32
    return %arg0, %c0_i32 : i32, i32
  }
}

</mosaic_0001>

<bundles_post_ra>
// kernel: _silu_impl.1
= control target key start
LH: loop header
LB: loop body
LE: loop exit
PB: predicated region body
PF: predicated region fallthrough
CT: control target
= control target key end

     0   :  { %s62_s0 = inlined_call_operand.vmem [shape: f32[1,2048], index: 0, kind: input, shape index: {}]   ;;  %s63_s1 = inlined_call_operand.vmem [shape: f32[1,2048], index: 1, kind: output, shape index: {}]  }
   0x1   :  { %v8_v0 = vld [vmem:[%s62_s0] sm:$0xff]  ;;  %v9_v1 = vld [vmem:[%s62_s0 + $0x8] sm:$0xff] }
   0x2   :  { %v30_v2 = vmul.f32 -1.442695, %v8_v0  ;;  %v31_v3 = vmul.f32 -1.442695, %v9_v1 }
   0x4   :  { %32 = vpow2.f32 %v30_v2 }
   0x5   :  { %34 = vpow2.f32 %v31_v3 }
  0x11   :  { %v33_v4 = vpop.eup %32 }
  0x12   :  { %v35_v5 = vpop.eup %34  ;;  %v16_v6 = vadd.f32 1.0, %v33_v4 }
  0x13   :  { %v17_v7 = vadd.f32 1.0, %v35_v5 }
  0x14   :  { %36 = vrcp.f32 %v16_v6 }
  0x15   :  { %38 = vrcp.f32 %v17_v7 }
  0x21   :  { %v37_v8 = vpop.eup %36 }
  0x22   :  { %v39_v9 = vpop.eup %38  ;;  %v22_v10 = vmul.f32 %v37_v8, %v8_v0 }
  0x23   :  { %v23_v11 = vmul.f32 %v39_v9, %v9_v1 }
  0x24   :  { %24 = vst [vmem:[%s63_s1] sm:$0xff] %v22_v10 }
  0x25   :  { %25 = vst [vmem:[%s63_s1 + $0x8] sm:$0xff] %v23_v11 }

</bundles_post_ra>
